<compile_context>
chip_gen: v7x
topology: tpu7x:2x2x1
jax: 0.10.0
libtpu: 0.0.40
codegen_flags: <defaults>
</compile_context>

<pallas_src>
import functools

import jax
import jax.numpy as jnp
import numpy as np
from jax.experimental import pallas as pl
from jax.experimental.pallas import tpu as pltpu


def _round_up(x: int, m: int) -> int:
    return (x + m - 1) // m * m


def _resident_spec(block_shape, index_map):
    """BlockSpec for a VMEM-resident operand (constant index_map): 1 buffer."""
    try:
        return pl.BlockSpec(block_shape, index_map, pipeline_mode=pl.Buffered(1))
    except TypeError:  # older BlockSpec without pipeline_mode kwarg
        return pl.BlockSpec(block_shape, index_map)


# ----------------------------- Pallas kernels -----------------------------

def gate_kernel(x_ref, wg_ref, bg_ref, probs_ref):
    # x_ref: (tT, Hp) compute dtype, wg_ref: (Hp, Ep) compute dtype,
    # bg_ref: (1, Ep) f32, probs_ref: (tT, Ep) f32.
    # Padded expert lanes carry bias = -1e30 (f32) -> exp underflows to exactly 0.
    logits = jnp.dot(x_ref[...], wg_ref[...], preferred_element_type=jnp.float32)
    logits = logits + bg_ref[...]
    m = jnp.max(logits, axis=-1, keepdims=True)
    ex = jnp.exp(logits - m)
    probs_ref[...] = ex / jnp.sum(ex, axis=-1, keepdims=True)


def moe_kernel(x_ref, w_ref, b_ref, cw_ref, o_ref, *, n_experts):
    # grid = (num_token_tiles,), all tiles independent ("parallel").
    # x_ref:  (tT, Hp)    activations (compute dtype)
    # w_ref:  (E, Hp, Hp) full expert stack, VMEM-resident (single-buffered)
    # b_ref:  (Ep, Hp)    f32 expert biases (rows >= E are zero)
    # cw_ref: (tT, Ep)    f32 dense combine weights (zero for unselected experts)
    # o_ref:  (tT, Hp)    output in the caller's dtype (single final store)
    xv = x_ref[...]
    cw = cw_ref[...]

    # Bias contribution of all selected experts at once: cw @ b -> (tT, Hp) f32.
    acc = jnp.dot(cw, b_ref[...], preferred_element_type=jnp.float32)

    # Statically unrolled expert loop; f32 value accumulation (no per-expert
    # o_ref read-modify-write -- compiler manages vregs / spills).
    for e in range(n_experts):
        y = jnp.dot(xv, w_ref[e], preferred_element_type=jnp.float32)
        acc = acc + y * cw[:, e:e + 1]          # static lane slice (tT, 1)

    o_ref[...] = acc.astype(o_ref.dtype)


# ----------------------------- wrappers -----------------------------

def gate_softmax(x_pad, wg_pad, bg_pad, *, tile_t):
    Tp, Hp = x_pad.shape
    Ep = wg_pad.shape[1]
    cb = jnp.dtype(x_pad.dtype).itemsize
    wb = jnp.dtype(wg_pad.dtype).itemsize

    footprint = (Hp * Ep * wb + Ep * 4                      # resident wg + bg
                 + 2 * tile_t * Hp * cb                     # x (double-buffered)
                 + 2 * tile_t * Ep * 4)                     # probs out
    vmem_limit = min(max(int(footprint * 1.25) + (4 << 20), 32 << 20), 100 << 20)

    cost = pl.CostEstimate(
        flops=2 * Tp * Hp * Ep + 6 * Tp * Ep,
        transcendentals=Tp * Ep,
        bytes_accessed=Tp * Hp * cb + Hp * Ep * wb + Ep * 4 + Tp * Ep * 4,
    )

    return pl.pallas_call(
        gate_kernel,
        out_shape=jax.ShapeDtypeStruct((Tp, Ep), jnp.float32),
        grid_spec=pltpu.PrefetchScalarGridSpec(
            num_scalar_prefetch=0,
            grid=(Tp // tile_t,),
            in_specs=[
                pl.BlockSpec((tile_t, Hp), lambda t: (t, 0)),
                _resident_spec((Hp, Ep), lambda t: (0, 0)),
                _resident_spec((1, Ep), lambda t: (0, 0)),
            ],
            out_specs=pl.BlockSpec((tile_t, Ep), lambda t: (t, 0)),
        ),
        compiler_params=pltpu.CompilerParams(
            dimension_semantics=("parallel",),
            vmem_limit_bytes=vmem_limit,
        ),
        cost_estimate=cost,
    )(x_pad, wg_pad, bg_pad)


def moe_combine(x_pad, w_pad, b_pad, cw_pad, *, tile_t, out_dtype):
    Tp, Hp = x_pad.shape
    E = w_pad.shape[0]
    Ep = cw_pad.shape[1]
    num_tiles = Tp // tile_t
    cb = jnp.dtype(x_pad.dtype).itemsize
    wb = jnp.dtype(w_pad.dtype).itemsize
    ob = jnp.dtype(out_dtype).itemsize

    # Real VMEM footprint: single-buffered resident stack + double-buffered tiles.
    footprint = (E * Hp * Hp * wb + Ep * Hp * 4             # resident weights + bias
                 + 2 * tile_t * Hp * cb                     # x
                 + 2 * tile_t * Ep * 4                      # cw
                 + 2 * tile_t * Hp * ob)                    # out
    vmem_limit = min(max(int(footprint * 1.25) + (4 << 20), 32 << 20), 100 << 20)

    cost = pl.CostEstimate(
        flops=2 * Tp * Hp * Hp * E + 2 * Tp * Ep * Hp + 2 * Tp * Hp * E,
        transcendentals=0,
        bytes_accessed=(Tp * Hp * cb + E * Hp * Hp * wb + Ep * Hp * 4
                        + Tp * Ep * 4 + Tp * Hp * ob),
    )

    return pl.pallas_call(
        functools.partial(moe_kernel, n_experts=E),
        out_shape=jax.ShapeDtypeStruct((Tp, Hp), out_dtype),
        grid_spec=pltpu.PrefetchScalarGridSpec(
            num_scalar_prefetch=0,
            grid=(num_tiles,),
            in_specs=[
                pl.BlockSpec((tile_t, Hp), lambda t: (t, 0)),
                _resident_spec((E, Hp, Hp), lambda t: (0, 0, 0)),   # resident stack
                _resident_spec((Ep, Hp), lambda t: (0, 0)),         # resident bias
                pl.BlockSpec((tile_t, Ep), lambda t: (t, 0)),
            ],
            out_specs=pl.BlockSpec((tile_t, Hp), lambda t: (t, 0)),
        ),
        compiler_params=pltpu.CompilerParams(
            dimension_semantics=("parallel",),
            vmem_limit_bytes=vmem_limit,
        ),
        cost_estimate=cost,
    )(x_pad, w_pad, b_pad, cw_pad)


# ----------------------------- parameter prep (hoisted, done once) -----------------------------

def prepare_moe_params(params, *, compute_dtype=jnp.bfloat16, mxu_align=128):
    """Pad + cast parameters once (hoisted out of the per-step forward).

    mxu_align=128 is optimal for v5e (4x128x128 MXU); on v6e/v7x (2x256x256)
    use 256 when H isn't already a multiple of 256 and the padded flops are ok.
    """
    H, E = params["wg"].shape
    Hp = _round_up(H, mxu_align)
    Ep = _round_up(E, 128)
    wg_pad = jnp.zeros((Hp, Ep), compute_dtype).at[:H, :E].set(
        params["wg"].astype(compute_dtype))
    bg_pad = jnp.full((1, Ep), -1e30, jnp.float32).at[0, :E].set(
        params["bg"].astype(jnp.float32))
    w_pad = jnp.zeros((E, Hp, Hp), compute_dtype).at[:, :H, :H].set(
        params["w_experts"].astype(compute_dtype))
    b_pad = jnp.zeros((Ep, Hp), jnp.float32).at[:E, :H].set(
        params["b_experts"].astype(jnp.float32))
    return {"wg": wg_pad, "bg": bg_pad, "w": w_pad, "b": b_pad}


# ----------------------------- forward -----------------------------

@functools.partial(jax.jit,
                   static_argnames=("n_experts", "hidden_size", "top_k", "tile_t"))
def sparse_moe_forward(x, prepared, *, n_experts, hidden_size, top_k, tile_t=256):
    """x: [bsz, seq_len, H]. Returns (final_output, top_k_index, routing_probs)."""
    bsz, seq_len, H = x.shape
    assert H == hidden_size
    E = n_experts
    T = bsz * seq_len
    Hp, Ep = prepared["wg"].shape
    compute_dtype = prepared["w"].dtype

    # ---- token tiling: lane/sublane-dense; keep tile count even (>=2) when T
    # allows so both v7x TensorCores get work from the "parallel" axis ----
    tile_t_eff = min(_round_up(tile_t, 8), _round_up(T, 8))
    num_tiles = -(-T // tile_t_eff)
    if num_tiles > 1 and num_tiles % 2 == 1:
        num_tiles += 1
        tile_t_eff = _round_up(-(-T // num_tiles), 8)
        num_tiles = -(-T // tile_t_eff)
    Tp = num_tiles * tile_t_eff

    # One padded activation copy in compute_dtype, shared by gate and combine.
    x_tok = x.reshape(T, H)
    x_pad = jnp.zeros((Tp, Hp), compute_dtype).at[:T, :H].set(
        x_tok.astype(compute_dtype))

    # ---- router: softmax(x @ Wg + bg) (Pallas, lane-dense padded expert dim) ----
    probs_pad = gate_softmax(x_pad, prepared["wg"], prepared["bg"], tile_t=tile_t_eff)
    routing_probs = probs_pad[:T, :E]

    # ---- top-k + renormalize (tiny, plain-JAX glue; kept f32 to the kernel) ----
    top_k_probs, top_k_index = jax.lax.top_k(routing_probs, top_k)
    top_k_probs = top_k_probs / jnp.sum(top_k_probs, axis=1, keepdims=True)

    # Dense combine weights, lane-dense padded to Ep experts (== index_add path).
    one_hot = jax.nn.one_hot(top_k_index, E, dtype=jnp.float32)
    combine_w = jnp.sum(one_hot * top_k_probs[..., None], axis=1)      # [T, E] f32
    cw_pad = jnp.zeros((Tp, Ep), jnp.float32).at[:T, :E].set(combine_w)

    # ---- expert FFNs + weighted combine (Pallas, MXU hot path) ----
    out_pad = moe_combine(x_pad, prepared["w"], prepared["b"], cw_pad,
                          tile_t=tile_t_eff, out_dtype=x.dtype)

    out = out_pad[:T, :H].reshape(bsz, seq_len, H)
    return out, top_k_index, routing_probs


# ----------------------------- references (plain JAX) -----------------------------

def reference_combine(x_tok, w_experts, b_experts, combine_w):
    y_all = jnp.einsum("th,ehk->tek", x_tok, w_experts) + b_experts[None]
    return jnp.sum(y_all * combine_w[:, :, None], axis=1)


def reference_forward(x, params, top_k):
    bsz, seq_len, H = x.shape
    x_tok = x.reshape(-1, H)
    logits = x_tok @ params["wg"] + params["bg"]
    probs = jax.nn.softmax(logits, axis=-1)
    tk_p, tk_i = jax.lax.top_k(probs, top_k)
    tk_p = tk_p / jnp.sum(tk_p, axis=1, keepdims=True)
    E = params["wg"].shape[1]
    cw = jnp.sum(jax.nn.one_hot(tk_i, E) * tk_p[..., None], axis=1)
    out = reference_combine(x_tok, params["w_experts"], params["b_experts"], cw)
    return out.reshape(bsz, seq_len, H), tk_i, probs


# ----------------------------- main -----------------------------

if __name__ == "__main__":
    def make_params(key, E, H):
        k_wg, k_bg, k_we, k_be, k_eb = jax.random.split(key, 5)
        return {
            # gate: nn.Linear(H, E) stored pre-transposed [H, E]
            "wg": jax.random.normal(k_wg, (H, E), jnp.float32) * 0.1,
            "bg": jax.random.normal(k_bg, (E,), jnp.float32) * 0.1,
            # experts: E x nn.Linear(H, H) stacked as [E, H_in, H_out]
            "w_experts": jax.random.normal(k_we, (E, H, H), jnp.float32) * 0.1,
            "b_experts": jax.random.normal(k_be, (E, H), jnp.float32) * 0.1,
            # expert_bias exists in the module but is unused in forward()
            "expert_bias": jax.random.normal(k_eb, (E,), jnp.float32),
        }

    key = jax.random.PRNGKey(0)

    # ---- Test 1: toy config MOEConfig(n_experts=8, top_k=2, hidden_size=32), f32 ----
    E, top_k, H = 8, 2, 32
    bsz, seq_len = 2, 8
    k_p, k_x, key = jax.random.split(key, 3)
    params = make_params(k_p, E, H)
    x = jax.random.normal(k_x, (bsz, seq_len, H), jnp.float32)

    prep_f32 = prepare_moe_params(params, compute_dtype=jnp.float32)
    out, tk_idx, probs = sparse_moe_forward(x, prep_f32, n_experts=E,
                                            hidden_size=H, top_k=top_k)
    jax.block_until_ready((out, tk_idx, probs))

    ref_out, ref_idx, ref_probs = reference_forward(x, params, top_k)
    assert out.shape == (bsz, seq_len, H)
    assert tk_idx.shape == (bsz * seq_len, top_k)
    assert probs.shape == (bsz * seq_len, E)
    np.testing.assert_allclose(np.asarray(probs), np.asarray(ref_probs),
                               rtol=1e-5, atol=1e-6)
    np.testing.assert_array_equal(np.asarray(tk_idx), np.asarray(ref_idx))
    np.testing.assert_allclose(np.asarray(out), np.asarray(ref_out),
                               rtol=1e-4, atol=1e-5)

    # ---- Test 2: multi-tile path (tail padding, even tile split), f32 compute ----
    E2, top_k2, H2 = 8, 2, 64
    bsz2, seq_len2 = 4, 300            # T = 1200 -> 6 tiles of 200 tokens
    k_p2, k_x2, key = jax.random.split(key, 3)
    params2 = make_params(k_p2, E2, H2)
    x2 = jax.random.normal(k_x2, (bsz2, seq_len2, H2), jnp.float32)

    prep2_f32 = prepare_moe_params(params2, compute_dtype=jnp.float32)
    out2, tk_idx2, probs2 = sparse_moe_forward(x2, prep2_f32, n_experts=E2,
                                               hidden_size=H2, top_k=top_k2)
    jax.block_until_ready((out2, tk_idx2, probs2))

    ref_probs2 = jax.nn.softmax(x2.reshape(-1, H2) @ params2["wg"] + params2["bg"], axis=-1)
    np.testing.assert_allclose(np.asarray(probs2), np.asarray(ref_probs2),
                               rtol=1e-5, atol=1e-6)
    # Tie-robust output check: reference built from the kernel's own top-k decision.
    tk_p2 = jnp.take_along_axis(probs2, tk_idx2, axis=1)
    tk_p2 = tk_p2 / jnp.sum(tk_p2, axis=1, keepdims=True)
    cw2 = jnp.sum(jax.nn.one_hot(tk_idx2, E2, dtype=jnp.float32) * tk_p2[..., None], axis=1)
    ref_out2 = reference_combine(x2.reshape(-1, H2), params2["w_experts"],
                                 params2["b_experts"], cw2)
    np.testing.assert_allclose(np.asarray(out2).reshape(-1, H2), np.asarray(ref_out2),
                               rtol=1e-4, atol=1e-4)

    # ---- Test 3: default bf16 compute path (gate + experts on MXU in bf16, f32 accum) ----
    prep2_bf16 = prepare_moe_params(params2)          # default compute_dtype = bf16
    out3, tk_idx3, probs3 = sparse_moe_forward(x2, prep2_bf16, n_experts=E2,
                                               hidden_size=H2, top_k=top_k2)
    jax.block_until_ready((out3, tk_idx3, probs3))

    xb = x2.reshape(-1, H2).astype(jnp.bfloat16).astype(jnp.float32)
    wgb = params2["wg"].astype(jnp.bfloat16).astype(jnp.float32)
    ref_probs3 = jax.nn.softmax(xb @ wgb + params2["bg"], axis=-1)
    np.testing.assert_allclose(np.asarray(probs3), np.asarray(ref_probs3),
                               rtol=1e-3, atol=1e-5)
    tk_p3 = jnp.take_along_axis(probs3, tk_idx3, axis=1)
    tk_p3 = tk_p3 / jnp.sum(tk_p3, axis=1, keepdims=True)
    cw3 = jnp.sum(jax.nn.one_hot(tk_idx3, E2, dtype=jnp.float32) * tk_p3[..., None], axis=1)
    web = params2["w_experts"].astype(jnp.bfloat16).astype(jnp.float32)
    ref_out3 = reference_combine(xb, web, params2["b_experts"], cw3)
    np.testing.assert_allclose(np.asarray(out3).reshape(-1, H2), np.asarray(ref_out3),
                               rtol=5e-3, atol=5e-3)

    print("KERNEL_OK")
</pallas_src>

<mosaic_0001>
module attributes {stable_mosaic.version = 11 : i64} {
  func.func @gate_kernel(%arg0: i32, %arg1: memref<16x128xf32, #tpu.memory_space<vmem>>, %arg2: memref<128x128xf32, #tpu.memory_space<vmem>>, %arg3: memref<1x128xf32, #tpu.memory_space<vmem>>, %arg4: memref<16x128xf32, #tpu.memory_space<vmem>>) attributes {dimension_semantics = [#tpu.dimension_semantics<parallel>], iteration_bounds = array<i64: 1>, scalar_prefetch = 0 : i64, scratch_operands = 0 : i64, tpu.core_type = #tpu.core_type<tc>, window_params = [{transform_indices = @transform_0, window_bounds = array<i64: 16, 128>}, {pipeline_mode = #tpu.pipeline_mode<synchronous>, transform_indices = @transform_1, window_bounds = array<i64: 128, 128>}, {pipeline_mode = #tpu.pipeline_mode<synchronous>, transform_indices = @transform_2, window_bounds = array<i64: 1, 128>}, {transform_indices = @transform_3, window_bounds = array<i64: 16, 128>}]} {
    %c0 = arith.constant 0 : index
    %c0_0 = arith.constant 0 : index
    %0 = vector.load %arg1[%c0, %c0_0] : memref<16x128xf32, #tpu.memory_space<vmem>>, vector<16x128xf32>
    %c0_1 = arith.constant 0 : index
    %c0_2 = arith.constant 0 : index
    %1 = vector.load %arg2[%c0_1, %c0_2] : memref<128x128xf32, #tpu.memory_space<vmem>>, vector<128x128xf32>
    %cst = arith.constant dense<0.000000e+00> : vector<16x128xf32>
    %2 = tpu.matmul %0, %1, %cst {dimension_numbers = #tpu.dot_dimension_numbers<[1], [0], [0], [1], [0, 0, 1, 1], [], []>} : vector<16x128xf32>, vector<128x128xf32>, vector<16x128xf32> -> vector<16x128xf32>
    %c0_3 = arith.constant 0 : index
    %c0_4 = arith.constant 0 : index
    %3 = vector.load %arg3[%c0_3, %c0_4] : memref<1x128xf32, #tpu.memory_space<vmem>>, vector<1x128xf32>
    %4 = vector.broadcast %3 : vector<1x128xf32> to vector<16x128xf32>
    %5 = arith.addf %2, %4 : vector<16x128xf32>
    %cst_5 = arith.constant dense<0xFF800000> : vector<16xf32>
    %6 = vector.multi_reduction <maximumf>, %5, %cst_5 [1] : vector<16x128xf32> to vector<16xf32>
    %7 = vector.shape_cast %6 : vector<16xf32> to vector<16x1xf32>
    %8 = vector.broadcast %7 : vector<16x1xf32> to vector<16x128xf32>
    %9 = arith.subf %5, %8 : vector<16x128xf32>
    %10 = math.exp %9 : vector<16x128xf32>
    %cst_6 = arith.constant dense<0.000000e+00> : vector<16xf32>
    %11 = vector.multi_reduction <add>, %10, %cst_6 [1] : vector<16x128xf32> to vector<16xf32>
    %12 = vector.shape_cast %11 : vector<16xf32> to vector<16x1xf32>
    %13 = vector.broadcast %12 : vector<16x1xf32> to vector<16x128xf32>
    %14 = arith.divf %10, %13 : vector<16x128xf32>
    %c0_7 = arith.constant 0 : index
    %c0_8 = arith.constant 0 : index
    %15 = vector.load %arg4[%c0_7, %c0_8] : memref<16x128xf32, #tpu.memory_space<vmem>>, vector<16x128xf32>
    tpu.vector_store %arg4[%c0_7, %c0_8], %14 {strides = array<i32>} : memref<16x128xf32, #tpu.memory_space<vmem>>, vector<16x128xf32>,
    return
  }
  func.func @transform_0(%arg0: i32) -> (i32, i32) {
    %c0_i32 = arith.constant 0 : i32
    %c0_i32_0 = arith.constant 0 : i32
    return %arg0, %c0_i32 : i32, i32
  }
  func.func @transform_1(%arg0: i32) -> (i32, i32) {
    %c0_i32 = arith.constant 0 : i32
    %c0_i32_0 = arith.constant 0 : i32
    %c0_i32_1 = arith.constant 0 : i32
    return %c0_i32, %c0_i32_0 : i32, i32
  }
  func.func @transform_2(%arg0: i32) -> (i32, i32) {
    %c0_i32 = arith.constant 0 : i32
    %c0_i32_0 = arith.constant 0 : i32
    %c0_i32_1 = arith.constant 0 : i32
    return %c0_i32, %c0_i32_0 : i32, i32
  }
  func.func @transform_3(%arg0: i32) -> (i32, i32) {
    %c0_i32 = arith.constant 0 : i32
    %c0_i32_0 = arith.constant 0 : i32
    return %arg0, %c0_i32 : i32, i32
  }
}

module attributes {stable_mosaic.version = 11 : i64} {
  func.func @moe_kernel(%arg0: i32, %arg1: memref<16x128xf32, #tpu.memory_space<vmem>>, %arg2: memref<8x128x128xf32, #tpu.memory_space<vmem>>, %arg3: memref<128x128xf32, #tpu.memory_space<vmem>>, %arg4: memref<16x128xf32, #tpu.memory_space<vmem>>, %arg5: memref<16x128xf32, #tpu.memory_space<vmem>>) attributes {dimension_semantics = [#tpu.dimension_semantics<parallel>], iteration_bounds = array<i64: 1>, scalar_prefetch = 0 : i64, scratch_operands = 0 : i64, tpu.core_type = #tpu.core_type<tc>, window_params = [{transform_indices = @transform_0, window_bounds = array<i64: 16, 128>}, {pipeline_mode = #tpu.pipeline_mode<synchronous>, transform_indices = @transform_1, window_bounds = array<i64: 8, 128, 128>}, {pipeline_mode = #tpu.pipeline_mode<synchronous>, transform_indices = @transform_2, window_bounds = array<i64: 128, 128>}, {transform_indices = @transform_3, window_bounds = array<i64: 16, 128>}, {transform_indices = @transform_4, window_bounds = array<i64: 16, 128>}]} {
    %c0 = arith.constant 0 : index
    %c0_0 = arith.constant 0 : index
    %0 = vector.load %arg1[%c0, %c0_0] : memref<16x128xf32, #tpu.memory_space<vmem>>, vector<16x128xf32>
    %c0_1 = arith.constant 0 : index
    %c0_2 = arith.constant 0 : index
    %1 = vector.load %arg4[%c0_1, %c0_2] : memref<16x128xf32, #tpu.memory_space<vmem>>, vector<16x128xf32>
    %c0_3 = arith.constant 0 : index
    %c0_4 = arith.constant 0 : index
    %2 = vector.load %arg3[%c0_3, %c0_4] : memref<128x128xf32, #tpu.memory_space<vmem>>, vector<128x128xf32>
    %cst = arith.constant dense<0.000000e+00> : vector<16x128xf32>
    %3 = tpu.matmul %1, %2, %cst {dimension_numbers = #tpu.dot_dimension_numbers<[1], [0], [0], [1], [0, 0, 1, 1], [], []>} : vector<16x128xf32>, vector<128x128xf32>, vector<16x128xf32> -> vector<16x128xf32>
    %c0_5 = arith.constant 0 : index
    %c0_6 = arith.constant 0 : index
    %c0_7 = arith.constant 0 : index
    %4 = vector.load %arg2[%c0_5, %c0_6, %c0_7] : memref<8x128x128xf32, #tpu.memory_space<vmem>>, vector<1x128x128xf32>
    %5 = vector.shape_cast %4 : vector<1x128x128xf32> to vector<128x128xf32>
    %cst_8 = arith.constant dense<0.000000e+00> : vector<16x128xf32>
    %6 = tpu.matmul %0, %5, %cst_8 {dimension_numbers = #tpu.dot_dimension_numbers<[1], [0], [0], [1], [0, 0, 1, 1], [], []>} : vector<16x128xf32>, vector<128x128xf32>, vector<16x128xf32> -> vector<16x128xf32>
    %7 = vector.extract_strided_slice %1 {offsets = [0, 0], sizes = [16, 1], strides = [1, 1]} : vector<16x128xf32> to vector<16x1xf32>
    %8 = vector.broadcast %7 : vector<16x1xf32> to vector<16x128xf32>
    %9 = arith.mulf %6, %8 : vector<16x128xf32>
    %10 = arith.addf %3, %9 : vector<16x128xf32>
    %c1 = arith.constant 1 : index
    %c0_9 = arith.constant 0 : index
    %c0_10 = arith.constant 0 : index
    %11 = vector.load %arg2[%c1, %c0_9, %c0_10] : memref<8x128x128xf32, #tpu.memory_space<vmem>>, vector<1x128x128xf32>
    %12 = vector.shape_cast %11 : vector<1x128x128xf32> to vector<128x128xf32>
    %cst_11 = arith.constant dense<0.000000e+00> : vector<16x128xf32>
    %13 = tpu.matmul %0, %12, %cst_11 {dimension_numbers = #tpu.dot_dimension_numbers<[1], [0], [0], [1], [0, 0, 1, 1], [], []>} : vector<16x128xf32>, vector<128x128xf32>, vector<16x128xf32> -> vector<16x128xf32>
    %14 = vector.extract_strided_slice %1 {offsets = [0, 1], sizes = [16, 1], strides = [1, 1]} : vector<16x128xf32> to vector<16x1xf32>
    %15 = vector.broadcast %14 : vector<16x1xf32> to vector<16x128xf32>
    %16 = arith.mulf %13, %15 : vector<16x128xf32>
    %17 = arith.addf %10, %16 : vector<16x128xf32>
    %c2 = arith.constant 2 : index
    %c0_12 = arith.constant 0 : index
    %c0_13 = arith.constant 0 : index
    %18 = vector.load %arg2[%c2, %c0_12, %c0_13] : memref<8x128x128xf32, #tpu.memory_space<vmem>>, vector<1x128x128xf32>
    %19 = vector.shape_cast %18 : vector<1x128x128xf32> to vector<128x128xf32>
    %cst_14 = arith.constant dense<0.000000e+00> : vector<16x128xf32>
    %20 = tpu.matmul %0, %19, %cst_14 {dimension_numbers = #tpu.dot_dimension_numbers<[1], [0], [0], [1], [0, 0, 1, 1], [], []>} : vector<16x128xf32>, vector<128x128xf32>, vector<16x128xf32> -> vector<16x128xf32>
    %21 = vector.extract_strided_slice %1 {offsets = [0, 2], sizes = [16, 1], strides = [1, 1]} : vector<16x128xf32> to vector<16x1xf32>
    %22 = vector.broadcast %21 : vector<16x1xf32> to vector<16x128xf32>
    %23 = arith.mulf %20, %22 : vector<16x128xf32>
    %24 = arith.addf %17, %23 : vector<16x128xf32>
    %c3 = arith.constant 3 : index
    %c0_15 = arith.constant 0 : index
    %c0_16 = arith.constant 0 : index
    %25 = vector.load %arg2[%c3, %c0_15, %c0_16] : memref<8x128x128xf32, #tpu.memory_space<vmem>>, vector<1x128x128xf32>
    %26 = vector.shape_cast %25 : vector<1x128x128xf32> to vector<128x128xf32>
    %cst_17 = arith.constant dense<0.000000e+00> : vector<16x128xf32>
    %27 = tpu.matmul %0, %26, %cst_17 {dimension_numbers = #tpu.dot_dimension_numbers<[1], [0], [0], [1], [0, 0, 1, 1], [], []>} : vector<16x128xf32>, vector<128x128xf32>, vector<16x128xf32> -> vector<16x128xf32>
    %28 = vector.extract_strided_slice %1 {offsets = [0, 3], sizes = [16, 1], strides = [1, 1]} : vector<16x128xf32> to vector<16x1xf32>
    %29 = vector.broadcast %28 : vector<16x1xf32> to vector<16x128xf32>
    %30 = arith.mulf %27, %29 : vector<16x128xf32>
    %31 = arith.addf %24, %30 : vector<16x128xf32>
    %c4 = arith.constant 4 : index
    %c0_18 = arith.constant 0 : index
    %c0_19 = arith.constant 0 : index
    %32 = vector.load %arg2[%c4, %c0_18, %c0_19] : memref<8x128x128xf32, #tpu.memory_space<vmem>>, vector<1x128x128xf32>
    %33 = vector.shape_cast %32 : vector<1x128x128xf32> to vector<128x128xf32>
    %cst_20 = arith.constant dense<0.000000e+00> : vector<16x128xf32>
    %34 = tpu.matmul %0, %33, %cst_20 {dimension_numbers = #tpu.dot_dimension_numbers<[1], [0], [0], [1], [0, 0, 1, 1], [], []>} : vector<16x128xf32>, vector<128x128xf32>, vector<16x128xf32> -> vector<16x128xf32>
    %35 = vector.extract_strided_slice %1 {offsets = [0, 4], sizes = [16, 1], strides = [1, 1]} : vector<16x128xf32> to vector<16x1xf32>
    %36 = vector.broadcast %35 : vector<16x1xf32> to vector<16x128xf32>
    %37 = arith.mulf %34, %36 : vector<16x128xf32>
    %38 = arith.addf %31, %37 : vector<16x128xf32>
    %c5 = arith.constant 5 : index
    %c0_21 = arith.constant 0 : index
    %c0_22 = arith.constant 0 : index
    %39 = vector.load %arg2[%c5, %c0_21, %c0_22] : memref<8x128x128xf32, #tpu.memory_space<vmem>>, vector<1x128x128xf32>
    %40 = vector.shape_cast %39 : vector<1x128x128xf32> to vector<128x128xf32>
    %cst_23 = arith.constant dense<0.000000e+00> : vector<16x128xf32>
    %41 = tpu.matmul %0, %40, %cst_23 {dimension_numbers = #tpu.dot_dimension_numbers<[1], [0], [0], [1], [0, 0, 1, 1], [], []>} : vector<16x128xf32>, vector<128x128xf32>, vector<16x128xf32> -> vector<16x128xf32>
    %42 = vector.extract_strided_slice %1 {offsets = [0, 5], sizes = [16, 1], strides = [1, 1]} : vector<16x128xf32> to vector<16x1xf32>
    %43 = vector.broadcast %42 : vector<16x1xf32> to vector<16x128xf32>
    %44 = arith.mulf %41, %43 : vector<16x128xf32>
    %45 = arith.addf %38, %44 : vector<16x128xf32>
    %c6 = arith.constant 6 : index
    %c0_24 = arith.constant 0 : index
    %c0_25 = arith.constant 0 : index
    %46 = vector.load %arg2[%c6, %c0_24, %c0_25] : memref<8x128x128xf32, #tpu.memory_space<vmem>>, vector<1x128x128xf32>
    %47 = vector.shape_cast %46 : vector<1x128x128xf32> to vector<128x128xf32>
    %cst_26 = arith.constant dense<0.000000e+00> : vector<16x128xf32>
    %48 = tpu.matmul %0, %47, %cst_26 {dimension_numbers = #tpu.dot_dimension_numbers<[1], [0], [0], [1], [0, 0, 1, 1], [], []>} : vector<16x128xf32>, vector<128x128xf32>, vector<16x128xf32> -> vector<16x128xf32>
    %49 = vector.extract_strided_slice %1 {offsets = [0, 6], sizes = [16, 1], strides = [1, 1]} : vector<16x128xf32> to vector<16x1xf32>
    %50 = vector.broadcast %49 : vector<16x1xf32> to vector<16x128xf32>
    %51 = arith.mulf %48, %50 : vector<16x128xf32>
    %52 = arith.addf %45, %51 : vector<16x128xf32>
    %c7 = arith.constant 7 : index
    %c0_27 = arith.constant 0 : index
    %c0_28 = arith.constant 0 : index
    %53 = vector.load %arg2[%c7, %c0_27, %c0_28] : memref<8x128x128xf32, #tpu.memory_space<vmem>>, vector<1x128x128xf32>
    %54 = vector.shape_cast %53 : vector<1x128x128xf32> to vector<128x128xf32>
    %cst_29 = arith.constant dense<0.000000e+00> : vector<16x128xf32>
    %55 = tpu.matmul %0, %54, %cst_29 {dimension_numbers = #tpu.dot_dimension_numbers<[1], [0], [0], [1], [0, 0, 1, 1], [], []>} : vector<16x128xf32>, vector<128x128xf32>, vector<16x128xf32> -> vector<16x128xf32>
    %56 = vector.extract_strided_slice %1 {offsets = [0, 7], sizes = [16, 1], strides = [1, 1]} : vector<16x128xf32> to vector<16x1xf32>
    %57 = vector.broadcast %56 : vector<16x1xf32> to vector<16x128xf32>
    %58 = arith.mulf %55, %57 : vector<16x128xf32>
    %59 = arith.addf %52, %58 : vector<16x128xf32>
    %c0_30 = arith.constant 0 : index
    %c0_31 = arith.constant 0 : index
    %60 = vector.load %arg5[%c0_30, %c0_31] : memref<16x128xf32, #tpu.memory_space<vmem>>, vector<16x128xf32>
    tpu.vector_store %arg5[%c0_30, %c0_31], %59 {strides = array<i32>} : memref<16x128xf32, #tpu.memory_space<vmem>>, vector<16x128xf32>,
    return
  }
  func.func @transform_0(%arg0: i32) -> (i32, i32) {
    %c0_i32 = arith.constant 0 : i32
    %c0_i32_0 = arith.constant 0 : i32
    return %arg0, %c0_i32 : i32, i32
  }
  func.func @transform_1(%arg0: i32) -> (i32, i32, i32) {
    %c0_i32 = arith.constant 0 : i32
    %c0_i32_0 = arith.constant 0 : i32
    %c0_i32_1 = arith.constant 0 : i32
    %c0_i32_2 = arith.constant 0 : i32
    return %c0_i32, %c0_i32_0, %c0_i32_1 : i32, i32, i32
  }
  func.func @transform_2(%arg0: i32) -> (i32, i32) {
    %c0_i32 = arith.constant 0 : i32
    %c0_i32_0 = arith.constant 0 : i32
    %c0_i32_1 = arith.constant 0 : i32
    return %c0_i32, %c0_i32_0 : i32, i32
  }
  func.func @transform_3(%arg0: i32) -> (i32, i32) {
    %c0_i32 = arith.constant 0 : i32
    %c0_i32_0 = arith.constant 0 : i32
    return %arg0, %c0_i32 : i32, i32
  }
  func.func @transform_4(%arg0: i32) -> (i32, i32) {
    %c0_i32 = arith.constant 0 : i32
    %c0_i32_0 = arith.constant 0 : i32
    return %arg0, %c0_i32 : i32, i32
  }
}

</mosaic_0001>

<bundles_post_ra>
// kernel: sparse_moe_forward.2
= control target key start
LH: loop header
LB: loop body
LE: loop exit
PB: predicated region body
PF: predicated region fallthrough
CT: control target
= control target key end

     0   :  { %8 = vsyncpa [#allocation3], 0  ;;  %s274_s12 = smov [#allocation2]   ;;  %s324_s0 = inlined_call_operand.vmem [shape: f32[16,128], index: 0, kind: input, shape index: {}]   ;;  %s325_s1 = inlined_call_operand.hbm [shape: f32[128,128], index: 1, kind: input, shape index: {}]   ;;  %s326_s2 = inlined_call_operand.vmem [shape: f32[1,128], index: 2, kind: input, shape index: {}]   ;;  %s327_s3 = inlined_call_operand.vmem [shape: f32[16,128], index: 3, kind: output, shape index: {}]  }
   0x1   :  { %s16_s13 = sshll.u32 %s274_s12, 4  ;;  %s250_s16 = scalar_lea.hbm %s325_s1, 2048  ;;  %s17_s13 = int_to_ptr.vmem [resolvable:$true] %s16_s13 }
   0x2   :  { %p251_p0 = scmp.ne.s32.totalorder %s325_s1, %s250_s16  ;;  %p254_p1 = scmp.lt.u32.totalorder %s250_s16, %s325_s1 }
   0x4   :  { %p256_p2 = pnand %p254_p1, %p251_p0 }
   0x6   :  { %259 = shalt.err (!%p256_p2)
}
   0x7   :  { %s260_s21 = scalar_lea.vmem %s17_s13, 2048  ;;  %p265_p4 = scmp.lt.s32.totalorder %s17_s13, %s17_s13 }
   0x8   :  { %p261_p3 = scmp.ne.s32.totalorder %s17_s13, %s260_s21  ;;  %p266_p5 = scmp.lt.s32.totalorder %s260_s21, %s260_s21 }
   0xa   :  { %p267_p6 = por %p266_p5, %p265_p4 }
   0xc   :  { %p268_p7 = pnand %p267_p6, %p261_p3 }
   0xe   :  { %271 = shalt.err (!%p268_p7)
}
   0xf   :  { %s275_s22 = smov 128   ;;  %s276_s23 = smov 8  }
  0x10   :  { %22 = dma.hbm_to_vmem [thread:$0]  %s325_s1, 2048, %s17_s13, [#allocation3], %s275_s22, %s275_s22, %s276_s23  }
  0x11   :  { %272 = dma.done.wait [#allocation3], 2048  }
  0x12   :  { %273 = vsyncadd [#allocation3], 4294965248  ;;  %v30_v0 = vld [vmem:[#allocation2] sm:$0xff]  ;;  %v31_v1 = vld [vmem:[#allocation2 + $0x8] sm:$0xff] }
  0x13   :  { %v32_v2 = vld [vmem:[#allocation2 + $0x10] sm:$0xff]  ;;  %v207_v3 = vpack.c.bf16 %v31_v1, %v30_v0  ;;  %v33_v4 = vld [vmem:[#allocation2 + $0x18] sm:$0xff]  ;;  %v34_v6 = vld [vmem:[#allocation2 + $0x20] sm:$0xff] }
  0x14   :  { %v211_v5 = vpack.c.bf16 %v33_v4, %v32_v2  ;;  %v35_v7 = vld [vmem:[#allocation2 + $0x28] sm:$0xff]  ;;  %v28_v9 = vld [vmem:[%s324_s0] sm:$0xff]  ;;  %v36_v10 = vld [vmem:[#allocation2 + $0x30] sm:$0xff] }
  0x15   :  { %208 = vmatprep.subr.bf16.mxu0 %v207_v3  ;;  %v215_v8 = vpack.c.bf16 %v35_v7, %v34_v6  ;;  %v37_v11 = vld [vmem:[#allocation2 + $0x38] sm:$0xff]  ;;  %204 = vmatprep.mubr.f32.mxu0 %v28_v9  ;;  %v38_v13 = vld [vmem:[#allocation2 + $0x40] sm:$0xff]  ;;  %v39_v14 = vld [vmem:[#allocation2 + $0x48] sm:$0xff] }
  0x16   :  { %210 = vmatpush3.bf16.msra.mxu0 %v207_v3  ;;  %v219_v12 = vpack.c.bf16 %v37_v11, %v36_v10  ;;  %v223_v15 = vpack.c.bf16 %v39_v14, %v38_v13  ;;  %v40_v16 = vld [vmem:[#allocation2 + $0x50] sm:$0xff]  ;;  %v41_v17 = vld [vmem:[#allocation2 + $0x58] sm:$0xff]  ;;  %v42_v19 = vld [vmem:[#allocation2 + $0x60] sm:$0xff] }
  0x17   :  { %212 = vmatprep.subr.bf16.mxu0 %v211_v5  ;;  %v227_v18 = vpack.c.bf16 %v41_v17, %v40_v16  ;;  %v43_v20 = vld [vmem:[#allocation2 + $0x68] sm:$0xff]  ;;  %v44_v22 = vld [vmem:[#allocation2 + $0x70] sm:$0xff]  ;;  %v45_v23 = vld [vmem:[#allocation2 + $0x78] sm:$0xff] }
  0x18   :  { %v231_v21 = vpack.c.bf16 %v43_v20, %v42_v19  ;;  %v235_v24 = vpack.c.bf16 %v45_v23, %v44_v22  ;;  %v29_v25 = vld [vmem:[%s324_s0 + $0x8] sm:$0xff]  ;;  %v153_v26 = vld [vmem:[%s326_s2] ss:$0 sm:$0xff] }
  0x1a   :  { %214 = vmatpush3.bf16.msra.mxu0 %v211_v5 }
  0x1b   :  { %216 = vmatprep.subr.bf16.mxu0 %v215_v8 }
  0x1e   :  { %218 = vmatpush3.bf16.msra.mxu0 %v215_v8 }
  0x1f   :  { %220 = vmatprep.subr.bf16.mxu0 %v219_v12 }
  0x22   :  { %222 = vmatpush3.bf16.msra.mxu0 %v219_v12 }
  0x23   :  { %224 = vmatprep.subr.bf16.mxu0 %v223_v15 }
  0x26   :  { %226 = vmatpush3.bf16.msra.mxu0 %v223_v15 }
  0x27   :  { %228 = vmatprep.subr.bf16.mxu0 %v227_v18 }
  0x2a   :  { %230 = vmatpush3.bf16.msra.mxu0 %v227_v18 }
  0x2b   :  { %232 = vmatprep.subr.bf16.mxu0 %v231_v21 }
  0x2e   :  { %234 = vmatpush3.bf16.msra.mxu0 %v231_v21 }
  0x2f   :  { %236 = vmatprep.subr.bf16.mxu0 %v235_v24 }
  0x32   :  { %238 = vmatpush3.bf16.msra.mxu0 %v235_v24 }
  0x35   :  { %205 = vmatmul.mubr.f32.vlgmr.msra.gmra.mrb[0].mxu0 %v29_v25 }
 0x108   :  { %v206_v27 = vpop.f32.mrb[0].mxu0 }
 0x109   :  { %v119_v28 = vpop.f32.mrb[1].mxu0  ;;  %v125_v30 = vadd.f32 %v206_v27, %v153_v26 }
 0x10a   :  { %v120_v29 = vadd.f32 %v153_v26, %v119_v28 }
 0x10c   :  { %128 = vmax.xlane.f32.xlu0 %v120_v29 }
 0x110   :  { %130 = vmax.xlane.f32.xlu0 %v125_v30 }
 0x199   :  { %v129_v31 = vpop.xlane.xlu0 %128 }
 0x19a   :  { %v132_v32 = vsub.f32 %v120_v29, %v129_v31 }
 0x19c   :  { %v134_v33 = vmul.f32 1.442695, %v132_v32 }
 0x19d   :  { %v131_v34 = vpop.xlane.xlu0 %130 }
 0x19e   :  { %242 = vpow2.f32 %v134_v33  ;;  %v133_v35 = vsub.f32 %v125_v30, %v131_v34 }
 0x1a0   :  { %v136_v36 = vmul.f32 1.442695, %v133_v35 }
 0x1a2   :  { %244 = vpow2.f32 %v136_v36 }
 0x1a8   :  { %v243_v37 = vpop.eup %242 }
 0x1a9   :  { %138 = vadd.xlane.f32.xlu1 %v243_v37 }
 0x1ac   :  { %v245_v38 = vpop.eup %244 }
 0x1ad   :  { %140 = vadd.xlane.f32.xlu1 %v245_v38 }
 0x236   :  { %v139_v39 = vpop.xlane.xlu1 %138 }
 0x237   :  { %246 = vrcp.f32 %v139_v39 }
 0x23a   :  { %v141_v40 = vpop.xlane.xlu1 %140 }
 0x23b   :  { %248 = vrcp.f32 %v141_v40 }
 0x241   :  { %v247_v41 = vpop.eup %246 }
 0x242   :  { %v143_v42 = vmul.f32 %v247_v41, %v243_v37 }
 0x244   :  { %146 = vst [vmem:[%s327_s3] sm:$0xff] %v143_v42 }
 0x245   :  { %v249_v43 = vpop.eup %248 }
 0x246   :  { %v145_v44 = vmul.f32 %v249_v43, %v245_v38 }
 0x248   :  { %147 = vst [vmem:[%s327_s3 + $0x8] sm:$0xff] %v145_v44 }
 0x249   :  { %152 = vsyncpa [#allocation3], 1 }

// kernel: sparse_moe_forward.3
= control target key start
LH: loop header
LB: loop body
LE: loop exit
PB: predicated region body
PF: predicated region fallthrough
CT: control target
= control target key end

     0   :  { %9 = vsyncpa [#allocation3], 0  ;;  %s1777_s15 = smov [#allocation2]   ;;  %s1933_s0 = inlined_call_operand.vmem [shape: f32[16,128], index: 0, kind: input, shape index: {}]   ;;  %s1934_s1 = inlined_call_operand.hbm [shape: f32[8,128,128], index: 1, kind: input, shape index: {}]   ;;  %s1935_s2 = inlined_call_operand.vmem [shape: f32[128,128], index: 2, kind: input, shape index: {}]   ;;  %s1936_s3 = inlined_call_operand.vmem [shape: f32[16,128], index: 3, kind: input, shape index: {}]   ;;  %s1937_s4 = inlined_call_operand.vmem [shape: f32[16,128], index: 4, kind: output, shape index: {}]  }
   0x1   :  { %s17_s16 = sshll.u32 %s1777_s15, 4  ;;  %s1753_s19 = scalar_lea.hbm %s1934_s1, 16384  ;;  %s18_s16 = int_to_ptr.vmem [resolvable:$true] %s17_s16 }
   0x2   :  { %p1754_p0 = scmp.ne.s32.totalorder %s1934_s1, %s1753_s19  ;;  %p1757_p1 = scmp.lt.u32.totalorder %s1753_s19, %s1934_s1 }
   0x4   :  { %p1759_p2 = pnand %p1757_p1, %p1754_p0 }
   0x6   :  { %1762 = shalt.err (!%p1759_p2)
}
   0x7   :  { %s1763_s24 = scalar_lea.vmem %s18_s16, 16384  ;;  %p1768_p4 = scmp.lt.s32.totalorder %s18_s16, %s18_s16 }
   0x8   :  { %p1764_p3 = scmp.ne.s32.totalorder %s18_s16, %s1763_s24  ;;  %p1769_p5 = scmp.lt.s32.totalorder %s1763_s24, %s1763_s24 }
   0xa   :  { %p1770_p6 = por %p1769_p5, %p1768_p4 }
   0xc   :  { %p1771_p7 = pnand %p1770_p6, %p1764_p3 }
   0xe   :  { %1774 = shalt.err (!%p1771_p7)
}
   0xf   :  { %s1778_s25 = smov 128   ;;  %s1779_s26 = smov 8  }
  0x10   :  { %23 = dma.hbm_to_vmem [thread:$0]  %s1934_s1, 16384, %s18_s16, [#allocation3], %s1778_s25, %s1778_s25, %s1779_s26  }
  0x11   :  { %1775 = dma.done.wait [#allocation3], 16384  }
  0x12   :  { %1776 = vsyncadd [#allocation3], 4294950912  ;;  %v1780_v0 = vmov 0   ;;  %v51_v1 = vld [vmem:[#allocation2] sm:$0xff]  ;;  %v52_v2 = vld [vmem:[#allocation2 + $0x8] sm:$0xff]  ;;  %v1781_v37 = vmov 1  }
  0x13   :  { %1740 = vset.pattern.permute.xlu0 %v1780_v0  ;;  %v35_v3 = vld [vmem:[%s1935_s2] sm:$0xff]  ;;  %v1441_v4 = vpack.c.bf16 %v52_v2, %v51_v1  ;;  %v36_v5 = vld [vmem:[%s1935_s2 + $0x8] sm:$0xff]  ;;  %v53_v6 = vld [vmem:[#allocation2 + $0x10] sm:$0xff]  ;;  %1741 = vset.pattern.permute.xlu1 %v1781_v37  ;;  %v1782_v51 = vmov 2  }
  0x14   :  { %v54_v7 = vld [vmem:[#allocation2 + $0x18] sm:$0xff]  ;;  %v1473_v8 = vpack.c.bf16 %v36_v5, %v35_v3  ;;  %v37_v10 = vld [vmem:[%s1935_s2 + $0x10] sm:$0xff]  ;;  %v55_v12 = vld [vmem:[#allocation2 + $0x20] sm:$0xff] }
  0x15   :  { %v1445_v9 = vpack.c.bf16 %v54_v7, %v53_v6  ;;  %v38_v11 = vld [vmem:[%s1935_s2 + $0x18] sm:$0xff]  ;;  %1442 = vmatprep.subr.bf16.mxu0 %v1441_v4  ;;  %v56_v14 = vld [vmem:[#allocation2 + $0x28] sm:$0xff]  ;;  %v39_v15 = vld [vmem:[%s1935_s2 + $0x20] sm:$0xff] }
  0x16   :  { %v1477_v13 = vpack.c.bf16 %v38_v11, %v37_v10  ;;  %v40_v16 = vld [vmem:[%s1935_s2 + $0x28] sm:$0xff]  ;;  %1444 = vmatpush3.bf16.msra.mxu0 %v1441_v4  ;;  %1474 = vmatprep.subr.bf16.mxu1 %v1473_v8  ;;  %v1449_v17 = vpack.c.bf16 %v56_v14, %v55_v12  ;;  %v57_v19 = vld [vmem:[#allocation2 + $0x30] sm:$0xff]  ;;  %v58_v20 = vld [vmem:[#allocation2 + $0x38] sm:$0xff] }
  0x17   :  { %1476 = vmatpush3.bf16.msra.mxu1 %v1473_v8  ;;  %1446 = vmatprep.subr.bf16.mxu0 %v1445_v9  ;;  %v1481_v18 = vpack.c.bf16 %v40_v16, %v39_v15  ;;  %v41_v21 = vld [vmem:[%s1935_s2 + $0x30] sm:$0xff]  ;;  %v42_v22 = vld [vmem:[%s1935_s2 + $0x38] sm:$0xff]  ;;  %v1453_v23 = vpack.c.bf16 %v58_v20, %v57_v19  ;;  %v59_v25 = vld [vmem:[#allocation2 + $0x40] sm:$0xff]  ;;  %v1784_v20 = vmov 4  }
  0x18   :  { %1478 = vmatprep.subr.bf16.mxu1 %v1477_v13  ;;  %v1485_v24 = vpack.c.bf16 %v42_v22, %v41_v21  ;;  %v60_v26 = vld [vmem:[#allocation2 + $0x48] sm:$0xff]  ;;  %v1852_v27 = vld [vmem:[%s1933_s0] sm:$0xff]  ;;  %v61_v33 = vld [vmem:[#allocation2 + $0x50] sm:$0xff] }
  0x19   :  { %v43_v28 = vld [vmem:[%s1935_s2 + $0x40] sm:$0xff]  ;;  %v44_v29 = vld [vmem:[%s1935_s2 + $0x48] sm:$0xff]  ;;  %1158 = vmatprep.mubr.f32.mxu0 %v1852_v27  ;;  %v1457_v31 = vpack.c.bf16 %v60_v26, %v59_v25  ;;  %v62_v34 = vld [vmem:[#allocation2 + $0x58] sm:$0xff] }
  0x1a   :  { %1448 = vmatpush3.bf16.msra.mxu0 %v1445_v9  ;;  %v1864_v30 = vld [vmem:[%s1936_s3] sm:$0xff]  ;;  %v1489_v32 = vpack.c.bf16 %v44_v29, %v43_v28  ;;  %v45_v35 = vld [vmem:[%s1935_s2 + $0x50] sm:$0xff]  ;;  %v46_v36 = vld [vmem:[%s1935_s2 + $0x58] sm:$0xff]  ;;  %v1461_v38 = vpack.c.bf16 %v62_v34, %v61_v33  ;;  %v1785_v28 = vmov 5  }
  0x1b   :  { %1480 = vmatpush3.bf16.msra.mxu1 %v1477_v13  ;;  %1450 = vmatprep.subr.bf16.mxu0 %v1449_v17  ;;  %v1493_v39 = vpack.c.bf16 %v46_v36, %v45_v35  ;;  %v63_v40 = vld [vmem:[#allocation2 + $0x60] sm:$0xff]  ;;  %v64_v41 = vld [vmem:[#allocation2 + $0x68] sm:$0xff]  ;;  %v65_v47 = vld [vmem:[#allocation2 + $0x70] sm:$0xff]  ;;  %v1783_v13 = vmov 3   ;;  %v1786_v36 = vmov 6  }
  0x1c   :  { %1482 = vmatprep.subr.bf16.mxu1 %v1481_v18  ;;  %1193 = vmatprep.mubr.f32.mxu1 %v1864_v30  ;;  %v1878_v42 = vld [vmem:[%s1936_s3 + $0x8] sm:$0xff]  ;;  %v47_v43 = vld [vmem:[%s1935_s2 + $0x60] sm:$0xff]  ;;  %v1465_v45 = vpack.c.bf16 %v64_v41, %v63_v40  ;;  %v66_v48 = vld [vmem:[#allocation2 + $0x78] sm:$0xff] }
  0x1d   :  { %144 = vperm.xlu0 %1740, %v1864_v30   ;;  %322 = vperm.xlu1 %1741, %v1864_v30   ;;  %v48_v44 = vld [vmem:[%s1935_s2 + $0x68] sm:$0xff]  ;;  %v49_v49 = vld [vmem:[%s1935_s2 + $0x70] sm:$0xff]  ;;  %v50_v50 = vld [vmem:[%s1935_s2 + $0x78] sm:$0xff]  ;;  %v1469_v52 = vpack.c.bf16 %v66_v48, %v65_v47 }
  0x1e   :  { %1452 = vmatpush3.bf16.msra.mxu0 %v1449_v17  ;;  %v1497_v46 = vpack.c.bf16 %v48_v44, %v47_v43  ;;  %v1501_v53 = vpack.c.bf16 %v50_v50, %v49_v49  ;;  %v230_v54 = vld [vmem:[#allocation2 + $0x80] sm:$0xff]  ;;  %v231_v55 = vld [vmem:[#allocation2 + $0x88] sm:$0xff]  ;;  %v232_v60 = vld [vmem:[#allocation2 + $0x90] sm:$0xff]  ;;  %v1787_v50 = vmov 7  }
  0x1f   :  { %1484 = vmatpush3.bf16.msra.mxu1 %v1481_v18  ;;  %1454 = vmatprep.subr.bf16.mxu0 %v1453_v23  ;;  %v334_v56 = vld [vmem:[#allocation2 + $0x100] sm:$0xff]  ;;  %v335_v57 = vld [vmem:[#allocation2 + $0x108] sm:$0xff]  ;;  %v1505_v58 = vpack.c.bf16 %v231_v55, %v230_v54  ;;  %v233_v61 = vld [vmem:[#allocation2 + $0x98] sm:$0xff] }
  0x20   :  { %1486 = vmatprep.subr.bf16.mxu1 %v1485_v24  ;;  %v1537_v59 = vpack.c.bf16 %v335_v57, %v334_v56  ;;  %v336_v62 = vld [vmem:[#allocation2 + $0x110] sm:$0xff]  ;;  %v337_v63 = vld [vmem:[#allocation2 + $0x118] sm:$0xff]  ;;  %v1899_v0 = vld [vmem:[%s1933_s0 + $0x8] sm:$0xff]  ;;  %v1509_v1 = vpack.c.bf16 %v233_v61, %v232_v60 }
  0x21   :  { %149 = vperm.xlu0 %1740, %v1878_v42   ;;  %326 = vperm.xlu1 %1741, %v1878_v42   ;;  %v1541_v2 = vpack.c.bf16 %v337_v63, %v336_v62  ;;  %v234_v3 = vld [vmem:[#allocation2 + $0xa0] sm:$0xff]  ;;  %v235_v4 = vld [vmem:[#allocation2 + $0xa8] sm:$0xff]  ;;  %v236_v9 = vld [vmem:[#allocation2 + $0xb0] sm:$0xff] }
  0x22   :  { %1456 = vmatpush3.bf16.msra.mxu0 %v1453_v23  ;;  %v338_v5 = vld [vmem:[#allocation2 + $0x120] sm:$0xff]  ;;  %v339_v6 = vld [vmem:[#allocation2 + $0x128] sm:$0xff]  ;;  %v1513_v7 = vpack.c.bf16 %v235_v4, %v234_v3  ;;  %v237_v10 = vld [vmem:[#allocation2 + $0xb8] sm:$0xff] }
  0x23   :  { %1488 = vmatpush3.bf16.msra.mxu1 %v1485_v24  ;;  %1458 = vmatprep.subr.bf16.mxu0 %v1457_v31  ;;  %v1545_v8 = vpack.c.bf16 %v339_v6, %v338_v5  ;;  %v340_v11 = vld [vmem:[#allocation2 + $0x130] sm:$0xff]  ;;  %v341_v12 = vld [vmem:[#allocation2 + $0x138] sm:$0xff]  ;;  %v1517_v14 = vpack.c.bf16 %v237_v10, %v236_v9  ;;  %v238_v16 = vld [vmem:[#allocation2 + $0xc0] sm:$0xff] }
  0x24   :  { %1490 = vmatprep.subr.bf16.mxu1 %v1489_v32  ;;  %v1549_v15 = vpack.c.bf16 %v341_v12, %v340_v11  ;;  %v239_v17 = vld [vmem:[#allocation2 + $0xc8] sm:$0xff]  ;;  %v342_v18 = vld [vmem:[#allocation2 + $0x140] sm:$0xff]  ;;  %v240_v23 = vld [vmem:[#allocation2 + $0xd0] sm:$0xff] }
  0x25   :  { %1742 = vset.pattern.permute.xlu0 %v1782_v51  ;;  %1743 = vset.pattern.permute.xlu1 %v1782_v51  ;;  %v343_v19 = vld [vmem:[#allocation2 + $0x148] sm:$0xff]  ;;  %v1521_v21 = vpack.c.bf16 %v239_v17, %v238_v16  ;;  %v241_v24 = vld [vmem:[#allocation2 + $0xd8] sm:$0xff]  ;;  %v344_v25 = vld [vmem:[#allocation2 + $0x150] sm:$0xff] }
  0x26   :  { %1460 = vmatpush3.bf16.msra.mxu0 %v1457_v31  ;;  %430 = vperm.xlu1 %1743, %v1878_v42   ;;  %v1553_v22 = vpack.c.bf16 %v343_v19, %v342_v18  ;;  %v345_v26 = vld [vmem:[#allocation2 + $0x158] sm:$0xff]  ;;  %v1525_v29 = vpack.c.bf16 %v241_v24, %v240_v23  ;;  %v243_v33 = vld [vmem:[#allocation2 + $0xe8] sm:$0xff]  ;;  %v346_v34 = vld [vmem:[#allocation2 + $0x160] sm:$0xff] }
  0x27   :  { %1492 = vmatpush3.bf16.msra.mxu1 %v1489_v32  ;;  %1462 = vmatprep.subr.bf16.mxu0 %v1461_v38  ;;  %v1557_v31 = vpack.c.bf16 %v345_v26, %v344_v25  ;;  %v242_v32 = vld [vmem:[#allocation2 + $0xe0] sm:$0xff]  ;;  %v347_v35 = vld [vmem:[#allocation2 + $0x168] sm:$0xff]  ;;  %v245_v40 = vld [vmem:[#allocation2 + $0xf8] sm:$0xff] }
  0x28   :  { %1494 = vmatprep.subr.bf16.mxu1 %v1493_v39  ;;  %426 = vperm.xlu0 %1742, %v1864_v30   ;;  %v1529_v37 = vpack.c.bf16 %v243_v33, %v242_v32  ;;  %v348_v41 = vld [vmem:[#allocation2 + $0x170] sm:$0xff]  ;;  %v349_v43 = vld [vmem:[#allocation2 + $0x178] sm:$0xff]  ;;  %v439_v47 = vld [vmem:[#allocation2 + $0x188] sm:$0xff] }
  0x29   :  { %v542_v48 = vld [vmem:[#allocation2 + $0x200] sm:$0xff]  ;;  %v543_v49 = vld [vmem:[#allocation2 + $0x208] sm:$0xff]  ;;  %v441_v54 = vld [vmem:[#allocation2 + $0x198] sm:$0xff] }
  0x2a   :  { %1464 = vmatpush3.bf16.msra.mxu0 %v1461_v38  ;;  %1744 = vset.pattern.permute.xlu1 %v1783_v13  ;;  %v1561_v38 = vpack.c.bf16 %v347_v35, %v346_v34  ;;  %v544_v55 = vld [vmem:[#allocation2 + $0x210] sm:$0xff]  ;;  %v545_v56 = vld [vmem:[#allocation2 + $0x218] sm:$0xff]  ;;  %v443_v60 = vld [vmem:[#allocation2 + $0x1a8] sm:$0xff] }
  0x2b   :  { %1496 = vmatpush3.bf16.msra.mxu1 %v1493_v39  ;;  %1466 = vmatprep.subr.bf16.mxu0 %v1465_v45  ;;  %v244_v39 = vld [vmem:[#allocation2 + $0xf0] sm:$0xff]  ;;  %v546_v61 = vld [vmem:[#allocation2 + $0x220] sm:$0xff]  ;;  %v547_v62 = vld [vmem:[#allocation2 + $0x228] sm:$0xff] }
  0x2c   :  { %1498 = vmatprep.subr.bf16.mxu1 %v1497_v46  ;;  %530 = vperm.xlu1 %1744, %v1864_v30   ;;  %v1533_v44 = vpack.c.bf16 %v245_v40, %v244_v39  ;;  %v445_v3 = vld [vmem:[#allocation2 + $0x1b8] sm:$0xff]  ;;  %v548_v4 = vld [vmem:[#allocation2 + $0x230] sm:$0xff]  ;;  %v550_v9 = vld [vmem:[#allocation2 + $0x240] sm:$0xff] }
  0x2d   :  { %1745 = vset.pattern.permute.xlu0 %v1783_v13  ;;  %v549_v5 = vld [vmem:[#allocation2 + $0x238] sm:$0xff]  ;;  %v551_v10 = vld [vmem:[#allocation2 + $0x248] sm:$0xff]  ;;  %v448_v13 = vld [vmem:[#allocation2 + $0x1d0] sm:$0xff] }
  0x2e   :  { %1468 = vmatpush3.bf16.msra.mxu0 %v1465_v45  ;;  %534 = vperm.xlu0 %1745, %v1878_v42   ;;  %v1565_v45 = vpack.c.bf16 %v349_v43, %v348_v41  ;;  %v1613_v6 = vpack.c.bf16 %v549_v5, %v548_v4  ;;  %v1617_v12 = vpack.c.bf16 %v551_v10, %v550_v9  ;;  %v450_v18 = vld [vmem:[#allocation2 + $0x1e0] sm:$0xff]  ;;  %v451_v19 = vld [vmem:[#allocation2 + $0x1e8] sm:$0xff]  ;;  %v452_v24 = vld [vmem:[#allocation2 + $0x1f0] sm:$0xff] }
  0x2f   :  { %1500 = vmatpush3.bf16.msra.mxu1 %v1497_v46  ;;  %1470 = vmatprep.subr.bf16.mxu0 %v1469_v52  ;;  %v438_v46 = vld [vmem:[#allocation2 + $0x180] sm:$0xff]  ;;  %v453_v25 = vld [vmem:[#allocation2 + $0x1f8] sm:$0xff]  ;;  %v556_v26 = vld [vmem:[#allocation2 + $0x270] sm:$0xff] }
  0x30   :  { %1502 = vmatprep.subr.bf16.mxu1 %v1501_v53  ;;  %1746 = vset.pattern.permute.xlu1 %v1784_v20  ;;  %v1569_v51 = vpack.c.bf16 %v439_v47, %v438_v46  ;;  %v554_v20 = vld [vmem:[#allocation2 + $0x260] sm:$0xff]  ;;  %v647_v33 = vld [vmem:[#allocation2 + $0x288] sm:$0xff]  ;;  %v649_v39 = vld [vmem:[#allocation2 + $0x298] sm:$0xff] }
  0x31   :  { %634 = vperm.xlu1 %1746, %v1864_v30   ;;  %v646_v32 = vld [vmem:[#allocation2 + $0x280] sm:$0xff]  ;;  %v751_v35 = vld [vmem:[#allocation2 + $0x308] sm:$0xff]  ;;  %v752_v40 = vld [vmem:[#allocation2 + $0x310] sm:$0xff] }
  0x32   :  { %1472 = vmatpush3.bf16.msra.mxu0 %v1469_v52  ;;  %1747 = vset.pattern.permute.xlu0 %v1785_v28  ;;  %v1601_v52 = vpack.c.bf16 %v543_v49, %v542_v48  ;;  %v750_v34 = vld [vmem:[#allocation2 + $0x300] sm:$0xff]  ;;  %v753_v41 = vld [vmem:[#allocation2 + $0x318] sm:$0xff]  ;;  %v651_v46 = vld [vmem:[#allocation2 + $0x2a8] sm:$0xff] }
  0x33   :  { %1504 = vmatpush3.bf16.msra.mxu1 %v1501_v53  ;;  %1506 = vmatprep.subr.bf16.mxu0 %v1505_v58  ;;  %v440_v53 = vld [vmem:[#allocation2 + $0x190] sm:$0xff]  ;;  %v754_v47 = vld [vmem:[#allocation2 + $0x320] sm:$0xff]  ;;  %v755_v48 = vld [vmem:[#allocation2 + $0x328] sm:$0xff] }
  0x34   :  { %1538 = vmatprep.subr.bf16.mxu1 %v1537_v59  ;;  %738 = vperm.xlu0 %1747, %v1864_v30   ;;  %v1573_v57 = vpack.c.bf16 %v441_v54, %v440_v53  ;;  %v756_v53 = vld [vmem:[#allocation2 + $0x330] sm:$0xff]  ;;  %v757_v54 = vld [vmem:[#allocation2 + $0x338] sm:$0xff] }
  0x35   :  { %1159 = vmatmul.mubr.f32.vlgmr.msra.gmra.mrb[0].mxu0 %v1899_v0  ;;  %638 = vperm.xlu1 %1746, %v1878_v42  }
  0x36   :  { %1508 = vmatpush3.bf16.msra.mxu0 %v1505_v58  ;;  %1194 = vmatmul.mubr.f32.vlgmr.msra.gmra.mrb[0].mxu1 %v1878_v42  ;;  %v1605_v58 = vpack.c.bf16 %v545_v56, %v544_v55  ;;  %v1677_v56 = vpack.c.bf16 %v757_v54, %v756_v53 }
  0x37   :  { %1540 = vmatpush3.bf16.msra.mxu1 %v1537_v59  ;;  %1510 = vmatprep.subr.bf16.mxu0 %v1509_v1  ;;  %v442_v59 = vld [vmem:[#allocation2 + $0x1a0] sm:$0xff] }
  0x38   :  { %1542 = vmatprep.subr.bf16.mxu1 %v1541_v2  ;;  %1228 = vmatprep.mubr.f32.mxu0 %v1852_v27  ;;  %v1577_v63 = vpack.c.bf16 %v443_v60, %v442_v59  ;;  %v758_v59 = vld [vmem:[#allocation2 + $0x340] sm:$0xff]  ;;  %v759_v60 = vld [vmem:[#allocation2 + $0x348] sm:$0xff] }
  0x39   :  { %1263 = vmatprep.mubr.f32.mxu1 %v1852_v27  ;;  %1750 = vset.pattern.permute.xlu0 %v1786_v36 }
  0x3a   :  { %1512 = vmatpush3.bf16.msra.mxu0 %v1509_v1  ;;  %1748 = vset.pattern.permute.xlu1 %v1785_v28  ;;  %v1609_v1 = vpack.c.bf16 %v547_v62, %v546_v61  ;;  %v557_v28 = vld [vmem:[#allocation2 + $0x278] sm:$0xff]  ;;  %v1681_v62 = vpack.c.bf16 %v759_v60, %v758_v59 }
  0x3b   :  { %1544 = vmatpush3.bf16.msra.mxu1 %v1541_v2  ;;  %1514 = vmatprep.subr.bf16.mxu0 %v1513_v7  ;;  %v444_v2 = vld [vmem:[#allocation2 + $0x1b0] sm:$0xff] }
  0x3c   :  { %1546 = vmatprep.subr.bf16.mxu1 %v1545_v8  ;;  %742 = vperm.xlu1 %1748, %v1878_v42  }
  0x3d   :  { %846 = vperm.xlu0 %1750, %v1878_v42  }
  0x3e   :  { %1516 = vmatpush3.bf16.msra.mxu0 %v1513_v7  ;;  %v446_v7 = vld [vmem:[#allocation2 + $0x1c0] sm:$0xff] }
  0x3f   :  { %1548 = vmatpush3.bf16.msra.mxu1 %v1545_v8  ;;  %1518 = vmatprep.subr.bf16.mxu0 %v1517_v14  ;;  %v447_v8 = vld [vmem:[#allocation2 + $0x1c8] sm:$0xff] }
  0x40   :  { %1550 = vmatprep.subr.bf16.mxu1 %v1549_v15  ;;  %1749 = vset.pattern.permute.xlu1 %v1786_v36  ;;  %v1585_v11 = vpack.c.bf16 %v447_v8, %v446_v7  ;;  %v1633_v36 = vpack.c.bf16 %v647_v33, %v646_v32  ;;  %v762_v7 = vld [vmem:[#allocation2 + $0x360] sm:$0xff]  ;;  %v763_v8 = vld [vmem:[#allocation2 + $0x368] sm:$0xff]  ;;  %v864_v33 = vld [vmem:[#allocation2 + $0x3d0] sm:$0xff] }
  0x41   :  { %1752 = vset.pattern.permute.xlu0 %v1787_v50  ;;  %842 = vperm.xlu1 %1749, %v1864_v30   ;;  %v1689_v10 = vpack.c.bf16 %v763_v8, %v762_v7 }
  0x42   :  { %1520 = vmatpush3.bf16.msra.mxu0 %v1517_v14  ;;  %v449_v14 = vld [vmem:[#allocation2 + $0x1d8] sm:$0xff] }
  0x43   :  { %1552 = vmatpush3.bf16.msra.mxu1 %v1549_v15  ;;  %1522 = vmatprep.subr.bf16.mxu0 %v1521_v21  ;;  %v552_v15 = vld [vmem:[#allocation2 + $0x250] sm:$0xff]  ;;  %v1589_v16 = vpack.c.bf16 %v449_v14, %v448_v13  ;;  %v765_v14 = vld [vmem:[#allocation2 + $0x378] sm:$0xff] }
  0x44   :  { %1554 = vmatprep.subr.bf16.mxu1 %v1553_v22  ;;  %v764_v13 = vld [vmem:[#allocation2 + $0x370] sm:$0xff] }
  0x45   :  { %1751 = vset.pattern.permute.xlu1 %v1787_v50  ;;  %v1673_v50 = vpack.c.bf16 %v755_v48, %v754_v47 }
  0x46   :  { %1524 = vmatpush3.bf16.msra.mxu0 %v1521_v21  ;;  %946 = vperm.xlu1 %1751, %v1864_v30   ;;  %v1581_v30 = vpack.c.bf16 %v445_v3, %v444_v2  ;;  %v555_v21 = vld [vmem:[#allocation2 + $0x268] sm:$0xff]  ;;  %v760_v2 = vld [vmem:[#allocation2 + $0x350] sm:$0xff]  ;;  %v761_v3 = vld [vmem:[#allocation2 + $0x358] sm:$0xff] }
  0x47   :  { %1556 = vmatpush3.bf16.msra.mxu1 %v1553_v22  ;;  %1526 = vmatprep.subr.bf16.mxu0 %v1525_v29  ;;  %v1593_v22 = vpack.c.bf16 %v451_v19, %v450_v18  ;;  %v1625_v23 = vpack.c.bf16 %v555_v21, %v554_v20  ;;  %v1685_v5 = vpack.c.bf16 %v761_v3, %v760_v2  ;;  %v856_v19 = vld [vmem:[#allocation2 + $0x390] sm:$0xff]  ;;  %v857_v20 = vld [vmem:[#allocation2 + $0x398] sm:$0xff] }
  0x48   :  { %1558 = vmatprep.subr.bf16.mxu1 %v1557_v31  ;;  %v1701_v21 = vpack.c.bf16 %v857_v20, %v856_v19 }
  0x4a   :  { %1528 = vmatpush3.bf16.msra.mxu0 %v1525_v29  ;;  %950 = vperm.xlu1 %1751, %v1878_v42   ;;  %v553_v42 = vld [vmem:[#allocation2 + $0x258] sm:$0xff]  ;;  %v1597_v29 = vpack.c.bf16 %v453_v25, %v452_v24  ;;  %v860_v25 = vld [vmem:[#allocation2 + $0x3b0] sm:$0xff] }
  0x4b   :  { %1560 = vmatpush3.bf16.msra.mxu1 %v1557_v31  ;;  %1530 = vmatprep.subr.bf16.mxu0 %v1529_v37  ;;  %v1621_v17 = vpack.c.bf16 %v553_v42, %v552_v15  ;;  %v1629_v31 = vpack.c.bf16 %v557_v28, %v556_v26  ;;  %v1693_v42 = vpack.c.bf16 %v765_v14, %v764_v13  ;;  %v861_v26 = vld [vmem:[#allocation2 + $0x3b8] sm:$0xff] }
  0x4c   :  { %1562 = vmatprep.subr.bf16.mxu1 %v1561_v38  ;;  %v1709_v28 = vpack.c.bf16 %v861_v26, %v860_v25 }
  0x4e   :  { %1532 = vmatpush3.bf16.msra.mxu0 %v1529_v37  ;;  %v1665_v37 = vpack.c.bf16 %v751_v35, %v750_v34  ;;  %v865_v34 = vld [vmem:[#allocation2 + $0x3d8] sm:$0xff] }
  0x4f   :  { %1564 = vmatpush3.bf16.msra.mxu1 %v1561_v38  ;;  %1534 = vmatprep.subr.bf16.mxu0 %v1533_v44  ;;  %v648_v38 = vld [vmem:[#allocation2 + $0x290] sm:$0xff]  ;;  %v1717_v35 = vpack.c.bf16 %v865_v34, %v864_v33 }
  0x50   :  { %1566 = vmatprep.subr.bf16.mxu1 %v1565_v45  ;;  %v1637_v43 = vpack.c.bf16 %v649_v39, %v648_v38  ;;  %v868_v38 = vld [vmem:[#allocation2 + $0x3f0] sm:$0xff]  ;;  %v869_v39 = vld [vmem:[#allocation2 + $0x3f8] sm:$0xff] }
  0x52   :  { %1536 = vmatpush3.bf16.msra.mxu0 %v1533_v44  ;;  %v1669_v44 = vpack.c.bf16 %v753_v41, %v752_v40  ;;  %v1725_v40 = vpack.c.bf16 %v869_v39, %v868_v38 }
  0x53   :  { %1568 = vmatpush3.bf16.msra.mxu1 %v1565_v45  ;;  %1570 = vmatprep.subr.bf16.mxu0 %v1569_v51  ;;  %v650_v45 = vld [vmem:[#allocation2 + $0x2a0] sm:$0xff] }
  0x54   :  { %1602 = vmatprep.subr.bf16.mxu1 %v1601_v52  ;;  %v1641_v49 = vpack.c.bf16 %v651_v46, %v650_v45 }
  0x55   :  { %1229 = vmatmul.mubr.f32.vlgmr.msra.gmra.mrb[2].mxu0 %v1899_v0 }
  0x56   :  { %1572 = vmatpush3.bf16.msra.mxu0 %v1569_v51  ;;  %1264 = vmatmul.mubr.f32.vlgmr.msra.gmra.mrb[2].mxu1 %v1899_v0  ;;  %v652_v51 = vld [vmem:[#allocation2 + $0x2b0] sm:$0xff] }
  0x57   :  { %1604 = vmatpush3.bf16.msra.mxu1 %v1601_v52  ;;  %1574 = vmatprep.subr.bf16.mxu0 %v1573_v57  ;;  %v653_v52 = vld [vmem:[#allocation2 + $0x2b8] sm:$0xff] }
  0x58   :  { %1606 = vmatprep.subr.bf16.mxu1 %v1605_v58  ;;  %1298 = vmatprep.mubr.f32.mxu0 %v1852_v27  ;;  %v1645_v55 = vpack.c.bf16 %v653_v52, %v652_v51 }
  0x59   :  { %1333 = vmatprep.mubr.f32.mxu1 %v1852_v27 }
  0x5a   :  { %1576 = vmatpush3.bf16.msra.mxu0 %v1573_v57  ;;  %v654_v57 = vld [vmem:[#allocation2 + $0x2c0] sm:$0xff] }
  0x5b   :  { %1608 = vmatpush3.bf16.msra.mxu1 %v1605_v58  ;;  %1578 = vmatprep.subr.bf16.mxu0 %v1577_v63  ;;  %v655_v58 = vld [vmem:[#allocation2 + $0x2c8] sm:$0xff] }
  0x5c   :  { %1610 = vmatprep.subr.bf16.mxu1 %v1609_v1  ;;  %v1649_v61 = vpack.c.bf16 %v655_v58, %v654_v57 }
  0x5e   :  { %1580 = vmatpush3.bf16.msra.mxu0 %v1577_v63  ;;  %v656_v63 = vld [vmem:[#allocation2 + $0x2d0] sm:$0xff] }
  0x5f   :  { %1612 = vmatpush3.bf16.msra.mxu1 %v1609_v1  ;;  %1582 = vmatprep.subr.bf16.mxu0 %v1581_v30  ;;  %v657_v1 = vld [vmem:[#allocation2 + $0x2d8] sm:$0xff] }
  0x60   :  { %1614 = vmatprep.subr.bf16.mxu1 %v1613_v6  ;;  %v1653_v4 = vpack.c.bf16 %v657_v1, %v656_v63 }
  0x62   :  { %1584 = vmatpush3.bf16.msra.mxu0 %v1581_v30  ;;  %v658_v30 = vld [vmem:[#allocation2 + $0x2e0] sm:$0xff] }
  0x63   :  { %1616 = vmatpush3.bf16.msra.mxu1 %v1613_v6  ;;  %1586 = vmatprep.subr.bf16.mxu0 %v1585_v11  ;;  %v659_v6 = vld [vmem:[#allocation2 + $0x2e8] sm:$0xff] }
  0x64   :  { %1618 = vmatprep.subr.bf16.mxu1 %v1617_v12  ;;  %v1657_v9 = vpack.c.bf16 %v659_v6, %v658_v30 }
  0x66   :  { %1588 = vmatpush3.bf16.msra.mxu0 %v1585_v11  ;;  %v660_v11 = vld [vmem:[#allocation2 + $0x2f0] sm:$0xff] }
  0x67   :  { %1620 = vmatpush3.bf16.msra.mxu1 %v1617_v12  ;;  %1590 = vmatprep.subr.bf16.mxu0 %v1589_v16  ;;  %v661_v12 = vld [vmem:[#allocation2 + $0x2f8] sm:$0xff] }
  0x68   :  { %1622 = vmatprep.subr.bf16.mxu1 %v1621_v17  ;;  %v1661_v15 = vpack.c.bf16 %v661_v12, %v660_v11 }
  0x6a   :  { %1592 = vmatpush3.bf16.msra.mxu0 %v1589_v16  ;;  %v854_v16 = vld [vmem:[#allocation2 + $0x380] sm:$0xff] }
  0x6b   :  { %1624 = vmatpush3.bf16.msra.mxu1 %v1621_v17  ;;  %1594 = vmatprep.subr.bf16.mxu0 %v1593_v22  ;;  %v855_v17 = vld [vmem:[#allocation2 + $0x388] sm:$0xff] }
  0x6c   :  { %1626 = vmatprep.subr.bf16.mxu1 %v1625_v23  ;;  %v1697_v18 = vpack.c.bf16 %v855_v17, %v854_v16 }
  0x6e   :  { %1596 = vmatpush3.bf16.msra.mxu0 %v1593_v22  ;;  %v858_v22 = vld [vmem:[#allocation2 + $0x3a0] sm:$0xff] }
  0x6f   :  { %1628 = vmatpush3.bf16.msra.mxu1 %v1625_v23  ;;  %1598 = vmatprep.subr.bf16.mxu0 %v1597_v29  ;;  %v859_v23 = vld [vmem:[#allocation2 + $0x3a8] sm:$0xff] }
  0x70   :  { %1630 = vmatprep.subr.bf16.mxu1 %v1629_v31  ;;  %v1705_v24 = vpack.c.bf16 %v859_v23, %v858_v22 }
  0x72   :  { %1600 = vmatpush3.bf16.msra.mxu0 %v1597_v29  ;;  %v862_v29 = vld [vmem:[#allocation2 + $0x3c0] sm:$0xff] }
  0x73   :  { %1632 = vmatpush3.bf16.msra.mxu1 %v1629_v31  ;;  %1634 = vmatprep.subr.bf16.mxu0 %v1633_v36  ;;  %v863_v31 = vld [vmem:[#allocation2 + $0x3c8] sm:$0xff] }
  0x74   :  { %1666 = vmatprep.subr.bf16.mxu1 %v1665_v37  ;;  %v1713_v32 = vpack.c.bf16 %v863_v31, %v862_v29 }
  0x75   :  { %1299 = vmatmul.mubr.f32.vlgmr.msra.gmra.mrb[4].mxu0 %v1899_v0 }
  0x76   :  { %1636 = vmatpush3.bf16.msra.mxu0 %v1633_v36  ;;  %1334 = vmatmul.mubr.f32.vlgmr.msra.gmra.mrb[4].mxu1 %v1899_v0  ;;  %v866_v36 = vld [vmem:[#allocation2 + $0x3e0] sm:$0xff] }
  0x77   :  { %1668 = vmatpush3.bf16.msra.mxu1 %v1665_v37  ;;  %1638 = vmatprep.subr.bf16.mxu0 %v1637_v43  ;;  %v867_v37 = vld [vmem:[#allocation2 + $0x3e8] sm:$0xff] }
  0x78   :  { %1670 = vmatprep.subr.bf16.mxu1 %v1669_v44  ;;  %1368 = vmatprep.mubr.f32.mxu0 %v1852_v27 }
  0x79   :  { %1403 = vmatprep.mubr.f32.mxu1 %v1852_v27 }
  0x7a   :  { %1640 = vmatpush3.bf16.msra.mxu0 %v1637_v43 }
  0x7b   :  { %1672 = vmatpush3.bf16.msra.mxu1 %v1669_v44  ;;  %1642 = vmatprep.subr.bf16.mxu0 %v1641_v49 }
  0x7c   :  { %1674 = vmatprep.subr.bf16.mxu1 %v1673_v50 }
  0x7e   :  { %1644 = vmatpush3.bf16.msra.mxu0 %v1641_v49 }
  0x7f   :  { %1676 = vmatpush3.bf16.msra.mxu1 %v1673_v50  ;;  %1646 = vmatprep.subr.bf16.mxu0 %v1645_v55 }
  0x80   :  { %1678 = vmatprep.subr.bf16.mxu1 %v1677_v56 }
  0x82   :  { %1648 = vmatpush3.bf16.msra.mxu0 %v1645_v55 }
  0x83   :  { %1680 = vmatpush3.bf16.msra.mxu1 %v1677_v56  ;;  %1650 = vmatprep.subr.bf16.mxu0 %v1649_v61 }
  0x84   :  { %1682 = vmatprep.subr.bf16.mxu1 %v1681_v62 }
  0x86   :  { %1652 = vmatpush3.bf16.msra.mxu0 %v1649_v61 }
  0x87   :  { %1684 = vmatpush3.bf16.msra.mxu1 %v1681_v62  ;;  %1654 = vmatprep.subr.bf16.mxu0 %v1653_v4 }
  0x88   :  { %1686 = vmatprep.subr.bf16.mxu1 %v1685_v5 }
  0x8a   :  { %1656 = vmatpush3.bf16.msra.mxu0 %v1653_v4 }
  0x8b   :  { %1688 = vmatpush3.bf16.msra.mxu1 %v1685_v5  ;;  %1658 = vmatprep.subr.bf16.mxu0 %v1657_v9 }
  0x8c   :  { %1690 = vmatprep.subr.bf16.mxu1 %v1689_v10 }
  0x8e   :  { %1660 = vmatpush3.bf16.msra.mxu0 %v1657_v9 }
  0x8f   :  { %1692 = vmatpush3.bf16.msra.mxu1 %v1689_v10  ;;  %1662 = vmatprep.subr.bf16.mxu0 %v1661_v15 }
  0x90   :  { %1694 = vmatprep.subr.bf16.mxu1 %v1693_v42 }
  0x92   :  { %1664 = vmatpush3.bf16.msra.mxu0 %v1661_v15 }
  0x93   :  { %1696 = vmatpush3.bf16.msra.mxu1 %v1693_v42  ;;  %1698 = vmatprep.subr.bf16.mxu0 %v1697_v18 }
  0x95   :  { %1369 = vmatmul.mubr.f32.vlgmr.msra.gmra.mrb[6].mxu0 %v1899_v0 }
  0x96   :  { %1700 = vmatpush3.bf16.msra.mxu0 %v1697_v18  ;;  %1404 = vmatmul.mubr.f32.vlgmr.msra.gmra.mrb[6].mxu1 %v1899_v0 }
  0x97   :  { %1702 = vmatprep.subr.bf16.mxu0 %v1701_v21  ;;  %1438 = vmatprep.mubr.f32.mxu0 %v1852_v27  ;;  %v1721_v27 = vpack.c.bf16 %v867_v37, %v866_v36 }
  0x9a   :  { %1704 = vmatpush3.bf16.msra.mxu0 %v1701_v21 }
  0x9b   :  { %1706 = vmatprep.subr.bf16.mxu0 %v1705_v24 }
  0x9c   :  { %v145_v41 = vpop.permute.xlu0 %144  ;;  %v323_v52 = vpop.permute.xlu1 %322 }
  0x9e   :  { %1708 = vmatpush3.bf16.msra.mxu0 %v1705_v24 }
  0x9f   :  { %1710 = vmatprep.subr.bf16.mxu0 %v1709_v28 }
  0xa0   :  { %v150_v43 = vpop.permute.xlu0 %149  ;;  %v327_v53 = vpop.permute.xlu1 %326 }
  0xa2   :  { %1712 = vmatpush3.bf16.msra.mxu0 %v1709_v28 }
  0xa3   :  { %1714 = vmatprep.subr.bf16.mxu0 %v1713_v32 }
  0xa5   :  { %v431_v54 = vpop.permute.xlu1 %430 }
  0xa6   :  { %1716 = vmatpush3.bf16.msra.mxu0 %v1713_v32 }
  0xa7   :  { %1718 = vmatprep.subr.bf16.mxu0 %v1717_v35  ;;  %v427_v56 = vpop.permute.xlu0 %426 }
  0xaa   :  { %1720 = vmatpush3.bf16.msra.mxu0 %v1717_v35 }
  0xab   :  { %1722 = vmatprep.subr.bf16.mxu0 %v1721_v27  ;;  %v531_v4 = vpop.permute.xlu1 %530 }
  0xad   :  { %v535_v30 = vpop.permute.xlu0 %534 }
  0xae   :  { %1724 = vmatpush3.bf16.msra.mxu0 %v1721_v27 }
  0xaf   :  { %1726 = vmatprep.subr.bf16.mxu0 %v1725_v40 }
  0xb0   :  { %v635_v5 = vpop.permute.xlu1 %634 }
  0xb2   :  { %1728 = vmatpush3.bf16.msra.mxu0 %v1725_v40 }
  0xb3   :  { %v739_v18 = vpop.permute.xlu0 %738 }
  0xb4   :  { %v639_v6 = vpop.permute.xlu1 %638 }
  0xb5   :  { %1439 = vmatmul.mubr.f32.vlgmr.msra.gmra.mrb[8].mxu0 %v1899_v0 }
  0xbb   :  { %v743_v19 = vpop.permute.xlu1 %742 }
  0xbc   :  { %v847_v20 = vpop.permute.xlu0 %846 }
  0xc0   :  { %v843_v22 = vpop.permute.xlu1 %842 }
  0xc5   :  { %v947_v36 = vpop.permute.xlu1 %946 }
  0xc9   :  { %v951_v37 = vpop.permute.xlu1 %950 }
 0x108   :  { %v1160_v44 = vpop.f32.mrb[0].mxu0 }
 0x109   :  { %v153_v45 = vmul.f32 %v1160_v44, %v150_v43  ;;  %v133_v46 = vpop.f32.mrb[1].mxu0  ;;  %v1195_v47 = vpop.f32.mrb[0].mxu1 }
 0x10a   :  { %v152_v48 = vmul.f32 %v145_v41, %v133_v46  ;;  %v220_v49 = vpop.f32.mrb[1].mxu1 }
 0x10b   :  { %v226_v50 = vadd.f32 %v1195_v47, %v153_v45 }
 0x10c   :  { %v221_v51 = vadd.f32 %v220_v49, %v152_v48 }
 0x128   :  { %v1230_v55 = vpop.f32.mrb[2].mxu0 }
 0x129   :  { %v330_v57 = vmul.f32 %v1230_v55, %v327_v53  ;;  %v312_v58 = vpop.f32.mrb[3].mxu0  ;;  %v1265_v59 = vpop.f32.mrb[2].mxu1 }
 0x12a   :  { %v329_v60 = vmul.f32 %v323_v52, %v312_v58  ;;  %v434_v0 = vmul.f32 %v1265_v59, %v431_v54  ;;  %v416_v61 = vpop.f32.mrb[3].mxu1 }
 0x12b   :  { %v332_v62 = vadd.f32 %v330_v57, %v226_v50  ;;  %v433_v63 = vmul.f32 %v427_v56, %v416_v61 }
 0x12c   :  { %v331_v1 = vadd.f32 %v329_v60, %v221_v51 }
 0x12d   :  { %v436_v2 = vadd.f32 %v434_v0, %v332_v62 }
 0x12e   :  { %v435_v3 = vadd.f32 %v433_v63, %v331_v1 }
 0x148   :  { %v1300_v7 = vpop.f32.mrb[4].mxu0 }
 0x149   :  { %v538_v8 = vmul.f32 %v1300_v7, %v535_v30  ;;  %v520_v9 = vpop.f32.mrb[5].mxu0  ;;  %v1335_v10 = vpop.f32.mrb[4].mxu1 }
 0x14a   :  { %v537_v11 = vmul.f32 %v531_v4, %v520_v9  ;;  %v642_v12 = vmul.f32 %v1335_v10, %v639_v6  ;;  %v624_v13 = vpop.f32.mrb[5].mxu1 }
 0x14b   :  { %v540_v14 = vadd.f32 %v538_v8, %v436_v2  ;;  %v641_v15 = vmul.f32 %v635_v5, %v624_v13 }
 0x14c   :  { %v539_v42 = vadd.f32 %v537_v11, %v435_v3 }
 0x14d   :  { %v644_v16 = vadd.f32 %v642_v12, %v540_v14 }
 0x14e   :  { %v643_v17 = vadd.f32 %v641_v15, %v539_v42 }
 0x168   :  { %v1370_v21 = vpop.f32.mrb[6].mxu0 }
 0x169   :  { %v746_v23 = vmul.f32 %v1370_v21, %v743_v19  ;;  %v728_v24 = vpop.f32.mrb[7].mxu0  ;;  %v1405_v25 = vpop.f32.mrb[6].mxu1 }
 0x16a   :  { %v745_v26 = vmul.f32 %v739_v18, %v728_v24  ;;  %v850_v28 = vmul.f32 %v1405_v25, %v847_v20  ;;  %v832_v29 = vpop.f32.mrb[7].mxu1 }
 0x16b   :  { %v748_v31 = vadd.f32 %v746_v23, %v644_v16  ;;  %v849_v32 = vmul.f32 %v843_v22, %v832_v29 }
 0x16c   :  { %v747_v33 = vadd.f32 %v745_v26, %v643_v17 }
 0x16d   :  { %v852_v34 = vadd.f32 %v850_v28, %v748_v31 }
 0x16e   :  { %v851_v35 = vadd.f32 %v849_v32, %v747_v33 }
 0x188   :  { %v1440_v27 = vpop.f32.mrb[8].mxu0 }
 0x189   :  { %v954_v38 = vmul.f32 %v1440_v27, %v951_v37  ;;  %v936_v39 = vpop.f32.mrb[9].mxu0 }
 0x18a   :  { %v953_v40 = vmul.f32 %v947_v36, %v936_v39 }
 0x18b   :  { %v956_v41 = vadd.f32 %v954_v38, %v852_v34 }
 0x18c   :  { %v955_v43 = vadd.f32 %v953_v40, %v851_v35 }
 0x18d   :  { %958 = vst [vmem:[%s1937_s4 + $0x8] sm:$0xff] %v956_v41 }
 0x18e   :  { %957 = vst [vmem:[%s1937_s4] sm:$0xff] %v955_v43 }
 0x18f   :  { %963 = vsyncpa [#allocation3], 1 }

</bundles_post_ra>
